<compile_context>
chip_gen: v5e
topology: v5e:2x2
jax: 0.10.0
libtpu: 0.0.40
codegen_flags: <defaults>
</compile_context>

<pallas_src>
import functools

import jax
import jax.numpy as jnp
from jax import lax
from jax.experimental import pallas as pl
from jax.experimental.pallas import tpu as pltpu

DQA_WEIGHT = 0.5
DQA_LAMBDA = 0.3


def _round_up(x, m):
    return (x + m - 1) // m * m


def _default_num_shards():
    # 2 TensorCores per chip only on v7x; v5e/v6e are single-TC, where the
    # leading "parallel" axis would just be a serial outer loop.
    try:
        kind = jax.devices()[0].device_kind.lower()
    except Exception:
        return 1
    return 2 if "7" in kind else 1


def _dqa_loss_kernel(attw_ref, out_ref, acc_ref, *, tb, nbs, nb_total, batch,
                     lam):
    s = pl.program_id(0)       # shard (parallel across TensorCores on v7x)
    j = pl.program_id(1)       # block within shard (arbitrary, accumulating)
    blk = s * nbs + j          # global batch-block index (may be out of range)

    @pl.when(j == 0)
    def _init():
        acc_ref[...] = jnp.zeros_like(acc_ref)

    @pl.when(blk < nb_total)   # clamped out-of-range shard blocks skip compute
    def _accumulate():
        # (TB, D, K) in the input dtype -> MXU directly, f32 accumulation.
        a = attw_ref[...]
        g = jnp.einsum("bnl,bml->bnm", a, a,
                       preferred_element_type=jnp.float32)   # (TB, D, D) f32
        d = g.shape[1]

        # ||G - lam*I||_F^2 = sum(G*G) - 2*lam*trace(G) + lam^2*NA ;
        # trace from the diagonal of the (small) gram; the lam^2*NA constant
        # is added once in the wrapper.
        ii = lax.broadcasted_iota(jnp.int32, (d, d), 0)
        jj = lax.broadcasted_iota(jnp.int32, (d, d), 1)
        diag = (ii == jj)[None, :, :]
        val = g * g - jnp.float32(2.0 * lam) * jnp.where(diag, g,
                                                         jnp.zeros_like(g))

        per = jnp.sum(val, axis=2)                      # (TB, D)
        per = jnp.sum(per, axis=1, keepdims=True)       # (TB, 1)

        # Mask only the per-sample vector (select semantics, so garbage/NaN in
        # padded rows of a partial last block cannot propagate).
        b0 = blk * tb
        bidx = lax.broadcasted_iota(jnp.int32, (tb, 1), 0)
        valid = (b0 + bidx) < batch
        acc_ref[...] = acc_ref[...] + jnp.where(valid, per,
                                                jnp.zeros_like(per))

    @pl.when(j == nbs - 1)
    def _finalize():
        tot = jnp.sum(acc_ref[...], axis=0, keepdims=True)       # (1, 1)
        out_ref[...] = jnp.broadcast_to(tot.reshape(1, 1, 1), out_ref.shape)


def dqa_loss_pallas(attw,
                    dqa_weight=DQA_WEIGHT,
                    dqa_lambda=DQA_LAMBDA,
                    *,
                    num_shards=None,
                    block_budget_bytes=8 << 20,
                    max_block_batch=1024,
                    vmem_limit_bytes=48 << 20):
    """Pallas implementation of DQALoss.forward. Returns a float32 scalar."""
    B, NA, L = attw.shape

    # Put the larger of (NA, L) in the lane dim so the gram is computed over
    # the smaller dim with the contraction over lanes (fewer/shorter MXU
    # pushes, smaller f32 gram).  ||A A^T||_F == ||A^T A||_F, tr equal.
    if NA > L:
        attw = jnp.swapaxes(attw, 1, 2)           # (B, L, NA)
    _, D, K = attw.shape                          # D = min(NA,L), K = max

    itemsize = jnp.dtype(attw.dtype).itemsize
    sub_in = {4: 8, 2: 16, 1: 32}.get(itemsize, 8)

    # Live VMEM per batch sample per grid step after (sublane,128) padding:
    # 2x input block (double buffer) + f32 gram and ~2 gram-sized temporaries
    # + per-sample f32 columns (mask + accumulator).
    in_bytes = _round_up(D, sub_in) * _round_up(K, 128) * itemsize
    gram_bytes = _round_up(D, 8) * _round_up(D, 128) * 4
    per_sample_live = 2 * in_bytes + 3 * gram_bytes + 2 * 128 * 4

    tb = block_budget_bytes // per_sample_live
    tb = int(max(1, min(B, tb, max_block_batch)))

    nb_total = int(pl.cdiv(B, tb))
    if num_shards is None:
        num_shards = _default_num_shards()
    ns = int(max(1, min(num_shards, nb_total)))
    nbs = int(pl.cdiv(nb_total, ns))

    def in_index_map(s, j):
        # Clamp; the kernel skips compute for out-of-range blocks and masks
        # the per-sample contributions of the partial last block.
        return (jnp.minimum(s * nbs + j, nb_total - 1), 0, 0)

    kernel = functools.partial(_dqa_loss_kernel, tb=tb, nbs=nbs,
                               nb_total=nb_total, batch=B,
                               lam=float(dqa_lambda))

    cost = pl.CostEstimate(
        flops=int(2 * B * D * D * K + 4 * B * D * D),
        transcendentals=0,
        bytes_accessed=int(B * D * K * itemsize + ns * 128 * 4))

    partials = pl.pallas_call(
        kernel,
        out_shape=jax.ShapeDtypeStruct((ns, 1, 128), jnp.float32),
        grid_spec=pltpu.PrefetchScalarGridSpec(
            num_scalar_prefetch=0,
            grid=(ns, nbs),
            in_specs=[pl.BlockSpec((tb, D, K), in_index_map)],
            out_specs=pl.BlockSpec((1, 1, 128), lambda s, j: (s, 0, 0)),
            scratch_shapes=[pltpu.VMEM((tb, 1), jnp.float32)],
        ),
        compiler_params=pltpu.CompilerParams(
            dimension_semantics=("parallel", "arbitrary"),
            vmem_limit_bytes=vmem_limit_bytes,
        ),
        cost_estimate=cost,
    )(attw)

    total = jnp.sum(partials[:, 0, 0])
    total = total + jnp.float32(B) * jnp.float32(dqa_lambda) ** 2 * jnp.float32(NA)
    return jnp.float32(dqa_weight) * total / jnp.float32(B)


def dqa_loss_ref(attw, dqa_weight=DQA_WEIGHT, dqa_lambda=DQA_LAMBDA):
    """Pure-JAX reference matching the PyTorch module semantics."""
    attw = attw.astype(jnp.float32)
    NA = attw.shape[1]
    eye = jnp.eye(NA, dtype=jnp.float32)[None] * dqa_lambda
    g = jnp.einsum("bnl,bml->bnm", attw, attw) - eye
    p_sq = jnp.sum(g * g, axis=(1, 2))             # ||.||_F ** 2 per batch
    return dqa_weight * jnp.mean(p_sq)


if __name__ == "__main__":
    key = jax.random.PRNGKey(0)

    # Test 1: shapes implied by the module (B, NA, L), default settings.
    B, NA, L = 2, 4, 8
    attw = jax.nn.softmax(
        jax.random.normal(key, (B, NA, L), dtype=jnp.float32), axis=-1)
    loss = jax.block_until_ready(dqa_loss_pallas(attw))
    ref = jax.block_until_ready(dqa_loss_ref(attw))
    assert jnp.allclose(loss, ref, rtol=1e-5, atol=1e-6), (loss, ref)

    # Test 2: multi-block batching, explicit 2-way shard (clamped block skip)
    # and the partial-last-block per-sample mask path.
    B2, NA2, L2 = 5, 4, 8
    attw2 = jax.nn.softmax(
        jax.random.normal(jax.random.PRNGKey(1), (B2, NA2, L2),
                          dtype=jnp.float32), axis=-1)
    loss2 = jax.block_until_ready(
        dqa_loss_pallas(attw2, num_shards=2, max_block_batch=2))
    ref2 = jax.block_until_ready(dqa_loss_ref(attw2))
    assert jnp.allclose(loss2, ref2, rtol=1e-5, atol=1e-6), (loss2, ref2)

    # Test 3: NA > L -> wrapper re-layout, gram over the smaller dim.
    B3, NA3, L3 = 3, 8, 4
    attw3 = jax.nn.softmax(
        jax.random.normal(jax.random.PRNGKey(2), (B3, NA3, L3),
                          dtype=jnp.float32), axis=-1)
    loss3 = jax.block_until_ready(dqa_loss_pallas(attw3))
    ref3 = jax.block_until_ready(dqa_loss_ref(attw3))
    assert jnp.allclose(loss3, ref3, rtol=1e-5, atol=1e-6), (loss3, ref3)

    # Test 4: bf16 input stays bf16 through HBM/VMEM and feeds the MXU
    # directly (f32 accumulation); compare vs f32 reference on the same
    # bf16-rounded values.
    attw4 = attw.astype(jnp.bfloat16)
    loss4 = jax.block_until_ready(dqa_loss_pallas(attw4))
    ref4 = jax.block_until_ready(dqa_loss_ref(attw4))
    assert jnp.allclose(loss4, ref4, rtol=1e-3, atol=1e-5), (loss4, ref4)

    print("KERNEL_OK")
</pallas_src>

<mosaic_0001>
module attributes {stable_mosaic.version = 11 : i64} {
  func.func @_dqa_loss_kernel(%arg0: i32, %arg1: i32, %arg2: memref<2x4x8xf32, #tpu.memory_space<vmem>>, %arg3: memref<1x1x128xf32, #tpu.memory_space<vmem>>, %arg4: memref<2x1xf32, #tpu.memory_space<vmem>>) attributes {dimension_semantics = [#tpu.dimension_semantics<parallel>, #tpu.dimension_semantics<arbitrary>], iteration_bounds = array<i64: 1, 1>, scalar_prefetch = 0 : i64, scratch_operands = 1 : i64, tpu.core_type = #tpu.core_type<tc>, window_params = [{transform_indices = @transform_0, window_bounds = array<i64: 2, 4, 8>}, {transform_indices = @transform_1, window_bounds = array<i64: 1, 1, 128>}]} {
    %c1_i32 = arith.constant 1 : i32
    %0 = arith.muli %arg0, %c1_i32 : i32
    %1 = arith.addi %0, %arg1 : i32
    %c0_i32 = arith.constant 0 : i32
    %2 = arith.cmpi eq, %arg1, %c0_i32 : i32
    %3 = arith.extui %2 : i1 to i32
    %c0_i32_0 = arith.constant 0 : i32
    %4 = arith.cmpi ne, %3, %c0_i32_0 : i32
    scf.if %4 {
      %cst = arith.constant 0.000000e+00 : f32
      %11 = vector.broadcast %cst : f32 to vector<2x1xf32>
      %c0 = arith.constant 0 : index
      %c0_5 = arith.constant 0 : index
      %12 = vector.load %arg4[%c0, %c0_5] : memref<2x1xf32, #tpu.memory_space<vmem>>, vector<2x1xf32>
      tpu.vector_store %arg4[%c0, %c0_5], %11 {strides = array<i32>} : memref<2x1xf32, #tpu.memory_space<vmem>>, vector<2x1xf32>,
    } else {
    }
    %c1_i32_1 = arith.constant 1 : i32
    %5 = arith.cmpi slt, %1, %c1_i32_1 : i32
    %6 = arith.extui %5 : i1 to i32
    %c0_i32_2 = arith.constant 0 : i32
    %7 = arith.cmpi ne, %6, %c0_i32_2 : i32
    scf.if %7 {
      %c0 = arith.constant 0 : index
      %c0_5 = arith.constant 0 : index
      %c0_6 = arith.constant 0 : index
      %11 = vector.load %arg2[%c0, %c0_5, %c0_6] : memref<2x4x8xf32, #tpu.memory_space<vmem>>, vector<2x4x8xf32>
      "tpu.trace_start"() <{level = 10 : i32, message = "bnl,bml->bnm"}> : () -> ()
      %cst = arith.constant dense<0.000000e+00> : vector<2x4x4xf32>
      %12 = tpu.matmul %11, %11, %cst {dimension_numbers = #tpu.dot_dimension_numbers<[2], [2], [1], [1], [0, 0, 0, 1, 1, 1], [0], [0]>} : vector<2x4x8xf32>, vector<2x4x8xf32>, vector<2x4x4xf32> -> vector<2x4x4xf32>
      "tpu.trace_stop"() : () -> ()
      %13 = tpu.iota {dimensions = array<i32: 0>} : vector<4x4xi32>
      %14 = tpu.iota {dimensions = array<i32: 1>} : vector<4x4xi32>
      %15 = arith.cmpi eq, %13, %14 : vector<4x4xi32>
      %16 = vector.shape_cast %15 : vector<4x4xi1> to vector<1x4x4xi1>
      %17 = arith.mulf %12, %12 : vector<2x4x4xf32>
      %cst_7 = arith.constant 0.000000e+00 : f32
      %18 = vector.broadcast %cst_7 : f32 to vector<2x4x4xf32>
      %19 = vector.shape_cast %16 : vector<1x4x4xi1> to vector<1x4x4xi1>
      %20 = vector.broadcast %19 : vector<1x4x4xi1> to vector<2x4x4xi1>
      %21 = arith.select %20, %12, %18 : vector<2x4x4xi1>, vector<2x4x4xf32>
      %cst_8 = arith.constant 6.000000e-01 : f32
      %22 = vector.broadcast %cst_8 : f32 to vector<2x4x4xf32>
      %23 = arith.mulf %22, %21 : vector<2x4x4xf32>
      %24 = arith.subf %17, %23 : vector<2x4x4xf32>
      %cst_9 = arith.constant dense<0.000000e+00> : vector<2x4xf32>
      %25 = vector.multi_reduction <add>, %24, %cst_9 [2] : vector<2x4x4xf32> to vector<2x4xf32>
      %cst_10 = arith.constant dense<0.000000e+00> : vector<2xf32>
      %26 = vector.multi_reduction <add>, %25, %cst_10 [1] : vector<2x4xf32> to vector<2xf32>
      %27 = vector.shape_cast %26 : vector<2xf32> to vector<2x1xf32>
      %c2_i32 = arith.constant 2 : i32
      %28 = arith.muli %1, %c2_i32 : i32
      %29 = tpu.iota {dimensions = array<i32: 0>} : vector<2x1xi32>
      %30 = vector.broadcast %28 : i32 to vector<2x1xi32>
      %31 = arith.addi %30, %29 : vector<2x1xi32>
      %c2_i32_11 = arith.constant 2 : i32
      %32 = vector.broadcast %c2_i32_11 : i32 to vector<2x1xi32>
      %33 = arith.cmpi slt, %31, %32 : vector<2x1xi32>
      %c0_12 = arith.constant 0 : index
      %c0_13 = arith.constant 0 : index
      %34 = vector.load %arg4[%c0_12, %c0_13] : memref<2x1xf32, #tpu.memory_space<vmem>>, vector<2x1xf32>
      %cst_14 = arith.constant 0.000000e+00 : f32
      %35 = vector.broadcast %cst_14 : f32 to vector<2x1xf32>
      %36 = arith.select %33, %27, %35 : vector<2x1xi1>, vector<2x1xf32>
      %37 = arith.addf %34, %36 : vector<2x1xf32>
      %c0_15 = arith.constant 0 : index
      %c0_16 = arith.constant 0 : index
      %38 = vector.load %arg4[%c0_15, %c0_16] : memref<2x1xf32, #tpu.memory_space<vmem>>, vector<2x1xf32>
      tpu.vector_store %arg4[%c0_15, %c0_16], %37 {strides = array<i32>} : memref<2x1xf32, #tpu.memory_space<vmem>>, vector<2x1xf32>,
    } else {
    }
    %c0_i32_3 = arith.constant 0 : i32
    %8 = arith.cmpi eq, %arg1, %c0_i32_3 : i32
    %9 = arith.extui %8 : i1 to i32
    %c0_i32_4 = arith.constant 0 : i32
    %10 = arith.cmpi ne, %9, %c0_i32_4 : i32
    scf.if %10 {
      %c0 = arith.constant 0 : index
      %c0_5 = arith.constant 0 : index
      %11 = vector.load %arg4[%c0, %c0_5] : memref<2x1xf32, #tpu.memory_space<vmem>>, vector<2x1xf32>
      %cst = arith.constant dense<0.000000e+00> : vector<1xf32>
      %12 = vector.multi_reduction <add>, %11, %cst [0] : vector<2x1xf32> to vector<1xf32>
      %13 = vector.shape_cast %12 : vector<1xf32> to vector<1x1xf32>
      %14 = vector.shape_cast %13 : vector<1x1xf32> to vector<1x1x1xf32>
      %15 = vector.shape_cast %14 : vector<1x1x1xf32> to vector<1x1x1xf32>
      %16 = vector.broadcast %15 : vector<1x1x1xf32> to vector<1x1x128xf32>
      %c0_6 = arith.constant 0 : index
      %c0_7 = arith.constant 0 : index
      %c0_8 = arith.constant 0 : index
      %17 = vector.load %arg3[%c0_6, %c0_7, %c0_8] : memref<1x1x128xf32, #tpu.memory_space<vmem>>, vector<1x1x128xf32>
      tpu.vector_store %arg3[%c0_6, %c0_7, %c0_8], %16 {strides = array<i32>} : memref<1x1x128xf32, #tpu.memory_space<vmem>>, vector<1x1x128xf32>,
    } else {
    }
    return
  }
  func.func @transform_0(%arg0: i32, %arg1: i32) -> (i32, i32, i32) {
    %c1_i32 = arith.constant 1 : i32
    %0 = arith.muli %arg0, %c1_i32 : i32
    %1 = arith.addi %0, %arg1 : i32
    %c0_i32 = arith.constant 0 : i32
    %2 = arith.minsi %1, %c0_i32 : i32
    %c0_i32_0 = arith.constant 0 : i32
    %c0_i32_1 = arith.constant 0 : i32
    %c0_i32_2 = arith.constant 0 : i32
    return %2, %c0_i32_0, %c0_i32_1 : i32, i32, i32
  }
  func.func @transform_1(%arg0: i32, %arg1: i32) -> (i32, i32, i32) {
    %c0_i32 = arith.constant 0 : i32
    %c0_i32_0 = arith.constant 0 : i32
    %c0_i32_1 = arith.constant 0 : i32
    return %arg0, %c0_i32, %c0_i32_0 : i32, i32, i32
  }
}

</mosaic_0001>

<bundles_post_ra>
// kernel: tpu_custom_call.1
= control target key start
LH: loop header
LB: loop body
LE: loop exit
PB: predicated region body
PF: predicated region fallthrough
CT: control target
= control target key end

     0   :  { %6 = vsyncpa [#allocation4], 0  ;;  %s263_s0 = inlined_call_operand.hbm [shape: f32[2,4,8], index: 0, kind: input, shape index: {}]   ;;  %s264_s1 = inlined_call_operand.hbm [shape: f32[1,1,128], index: 1, kind: output, shape index: {}]  }
   0x1   :  { %7 = vsyncpa [#allocation5], 0  ;;  %s18_s8 = sshll.u32 %s263_s0, 4  ;;  %s238_s9 = smov [#allocation3]   ;;  %s19_s8 = int_to_ptr.hbm [resolvable:$true] %s18_s8 }
   0x2   :  { %s20_s10 = sshll.u32 %s238_s9, 4  ;;  %s239_s11 = smov 64   ;;  %s21_s10 = int_to_ptr.vmem [resolvable:$true] %s20_s10 }
   0x3   :  { %s240_s12 = smov 4  }
   0x4   :  { %26 = dma.hbm_to_vmem [thread:$0]  %s19_s8, 128, %s21_s10, [#allocation4], %s239_s11, %s239_s11, %s240_s12  }
   0x5   :  { %234 = dma.done.wait [#allocation4], 128  }
   0x6   :  { %235 = vsyncadd [#allocation4], 4294967168  ;;  %vm48_vm0 = vcmask 64512   ;;  %v46_v0 = vld [vmem:[#allocation3] sm:$0xf]  ;;  %v95_v2 = vlaneseq  ;;  %vm110_vm2 = vcmask 27648  }
   0x7   :  { %v47_v1 = vld [vmem:[#allocation3 + $0x4] sm:$0xf]  ;;  %174 = vmatpush.xpose.msk.msra.mxu0 %vm48_vm0, %v46_v0  ;;  %vm40_vm3 = vcmask 1024   ;;  %v241_v17 = vmov 0.0   ;;  %vm121_vm4 = vcmask 1041409   ;;  %vm124_vm5 = vcmask 25600  }
   0x8   :  { %176 = vmatpush.xpose.msk.msra.mxu1 %vm48_vm0, %v47_v1  ;;  %v96_v3 = vshrl.u32 %v95_v2, 7  ;;  %v98_v4 = vand.u32 127, %v95_v2  ;;  %41 = vst.msk [vmem:[#allocation2] sm:$0x3] %vm40_vm3, %v241_v17  ;;  %v242_v24 = vmov 0   ;;  %s243_s0 = smov [#allocation6]  }
   0x9   :  { %184 = vset.pattern.permute.xlu1 %v242_v24  ;;  %185 = vset.pattern.permute.xlu0 %v242_v24  ;;  %s160_s13 = sshll.u32 %s243_s0, 4  ;;  %s162_s16 = sshll.u32 %s264_s1, 4  ;;  %s161_s13 = int_to_ptr.vmem [resolvable:$true] %s160_s13  ;;  %s163_s16 = int_to_ptr.hbm [resolvable:$true] %s162_s16 }
   0xa   :  { %175 = vmatmul.msk.f32.vlgmr.msra.gmra.mxu0 %vm48_vm0, %v46_v0  ;;  %vm99_vm1 = vcmp.eq.s32.totalorder %v96_v3, %v98_v4  ;;  %vm131_vm6 = vcmp.lt.s32.totalorder %v96_v3, 2 }
   0xb   :  { %177 = vmatmul.msk.f32.vlgmr.msra.gmra.mxu1 %vm48_vm0, %v47_v1 }
   0xf   :  { %v132_v25 = vld [vmem:[#allocation2] sm:$0x3] }
  0x87   :  { %v69_v5 = vpop.f32.mrf.mxu0 }
  0x88   :  { %v92_v6 = vpop.f32.mrf.mxu1  ;;  %v100_v7 = vmul.f32 %v69_v5, %v69_v5  ;;  %v104_v8 = vsel %vm99_vm1, %v69_v5, 0.0 }
  0x89   :  { %v105_v9 = vsel %vm99_vm1, %v92_v6, 0.0  ;;  %v106_v10 = vmul.f32 0.6, %v104_v8  ;;  %v101_v11 = vmul.f32 %v92_v6, %v92_v6 }
  0x8a   :  { %v107_v12 = vmul.f32 0.6, %v105_v9 }
  0x8b   :  { %v108_v13 = vsub.f32 %v100_v7, %v106_v10 }
  0x8c   :  { %v109_v15 = vsub.f32 %v101_v11, %v107_v12 }
  0x8d   :  { %v111_v14 = vsel %vm110_vm2, %v108_v13, 0.0 }
  0x8e   :  { %112 = vadd.xlane.f32.xlu0 %v111_v14  ;;  %v114_v16 = vsel %vm110_vm2, %v109_v15, 0.0 }
  0x96   :  { %115 = vadd.xlane.f32.xlu0 %v114_v16 }
 0x101   :  { %v113_v18 = vpop.xlane.xlu0 %112 }
 0x102   :  { %v119_v20 = vperm.slane %v113_v18, %v98_v4 }
 0x109   :  { %v116_v19 = vpop.xlane.xlu0 %115 }
 0x10a   :  { %v120_v21 = vperm.slane %v116_v19, %v98_v4 }
 0x10c   :  { %v122_v22 = vsel %vm121_vm4, %v120_v21, %v119_v20 }
 0x10d   :  { %v125_v23 = vsel %vm124_vm5, %v122_v22, 0.0 }
 0x10e   :  { %126 = vadd.xlane.f32.xlu1 %v125_v23 }
 0x181   :  { %v127_v26 = vpop.xlane.xlu1 %126 }
 0x182   :  { %v133_v27 = vsel %vm131_vm6, %v127_v26, 0.0 }
 0x183   :  { %v134_v28 = vadd.f32 %v133_v27, %v132_v25 }
 0x185   :  { %136 = vst.msk [vmem:[#allocation2] sm:$0x3] %vm40_vm3, %v134_v28 }
 0x18c   :  { %v140_v29 = vld [vmem:[#allocation2] sm:$0x3] }
 0x18d   :  { %v142_v30 = vsel %vm40_vm3, %v140_v29, 0.0 }
 0x18e   :  { %v143_v31 = vrot.slane %v142_v30, 4 }
 0x190   :  { %v144_v32 = vadd.f32 %v143_v31, %v142_v30 }
 0x192   :  { %v145_v33 = vrot.slane %v144_v32, 2 }
 0x194   :  { %v146_v34 = vadd.f32 %v145_v33, %v144_v32 }
 0x196   :  { %v147_v35 = vrot.slane %v146_v34, 1 }
 0x198   :  { %v148_v36 = vadd.f32 %v147_v35, %v146_v34 }
 0x19a   :  { %151 = vperm.xlu1 %184, %v148_v36  }
 0x20c   :  { %v152_v37 = vpop.permute.xlu1 %151 }
 0x20d   :  { %154 = vst [vmem:[#allocation6] sm:$0x1] %v152_v37 }
 0x20e   :  { %165 = dma.vmem_to_hbm [thread:$0]  %s161_s13, 16, %s163_s16, [#allocation5]  }
 0x20f   :  { %236 = dma.done.wait [#allocation5], 16  }
 0x210   :  { %237 = vsyncadd [#allocation5], 4294967280 }
 0x211   :  { %170 = vsyncpa [#allocation4], 1 }
 0x212   :  { %171 = vsyncpa [#allocation5], 1 }

</bundles_post_ra>
